<compile_context>
chip_gen: v7x
topology: tpu7x:2x2x1
jax: 0.10.0
libtpu: 0.0.40
codegen_flags: <defaults>
</compile_context>

<pallas_src>
import functools

import jax
import jax.numpy as jnp
from jax.experimental import pallas as pl
from jax.experimental.pallas import tpu as pltpu

_LANE = 128      # TPU lane width
_W2_ROWS = 8     # sublane padding for the fc2 weight row (MXU/tile alignment)


def _round_up(a: int, b: int) -> int:
    return (a + b - 1) // b * b


def _tpu_config():
    """(n_cores_to_shard_grid_over, use_bf16_elementwise) from the device kind."""
    kind = ""
    try:
        kind = jax.devices()[0].device_kind.lower()
    except Exception:
        pass
    # Chips with two TensorCores behind one device (megacore / v7x): give the
    # "parallel" grid axis at least 2 tiles so both cores get work.
    two_core = any(t in kind for t in ("v4", "v5p", "v7", "tpu7"))
    # bf16 VALU exists from v6e onward; older chips keep the f32 VPU path.
    use_bf16 = not any(t in kind for t in ("v2", "v3", "v4", "v5"))
    return (2 if two_core else 1), use_bf16


def mlp_kernel(x_ref, w1_ref, b1_ref, w2_ref, b2_ref, o_ref):
    """One lane-dense batch tile of: out = fc2(relu(fc1(x))).

    x_ref : (1, TB)         TB batch scalars on the lane axis (compute dtype)
    w1_ref: (H, 1)          fc1.weight as a column        (compute dtype)
    b1_ref: (H, 1)          fc1.bias   as a column        (compute dtype)
    w2_ref: (8, H)          fc2.weight in row 0, rows 1..7 zero (compute dtype)
    b2_ref: (1,) in SMEM    fc2.bias scalar (f32)
    o_ref : (1, TB)         f32 output
    """
    x = x_ref[...]                                          # (1, TB)
    # fc1 + ReLU: broadcasted outer product on the VPU -> (H, TB).
    # (bf16 on v6e/v7x: packed vregs, ~2x elementwise throughput.)
    h = jnp.maximum(x * w1_ref[...] + b1_ref[...], 0.0)
    # fc2: reduction over H on the (otherwise idle) MXU:
    # (8, H) @ (H, TB) -> (8, TB); only row 0 is real.
    acc = jnp.dot(w2_ref[...], h, preferred_element_type=jnp.float32)
    o_ref[...] = acc[0:1, :] + b2_ref[0]


@functools.partial(jax.jit, static_argnames=("max_tile", "n_cores", "use_bf16"))
def _net_forward_impl(x, w1, b1, w2, b2, *, max_tile, n_cores, use_bf16):
    B = x.shape[0]
    H = w1.shape[0]
    cdt = jnp.bfloat16 if use_bf16 else jnp.float32   # elementwise compute dtype

    # --- exact-fit, lane-aligned batch tiling --------------------------------
    b_lanes = _round_up(max(B, 1), _LANE)             # minimal lane padding of B
    min_tiles = pl.cdiv(b_lanes, max_tile)            # respect VMEM-friendly cap
    n_tiles = _round_up(min_tiles, n_cores)           # shard across TCs on v7x
    tile = _round_up(pl.cdiv(b_lanes, n_tiles), _LANE)
    n_tiles = pl.cdiv(b_lanes, tile)                  # drop empty tiles (tiny B)
    b_pad = n_tiles * tile

    # --- lane-dense batch row + weights in kernel layout ---------------------
    x_row = jnp.pad(x.reshape(B).astype(jnp.float32),
                    (0, b_pad - B)).reshape(1, b_pad).astype(cdt)
    w1_col = w1.reshape(H, 1).astype(cdt)
    b1_col = b1.reshape(H, 1).astype(cdt)
    w2_pad = jnp.zeros((_W2_ROWS, H), cdt).at[0, :].set(w2.reshape(H).astype(cdt))
    b2_s = b2.reshape(1).astype(jnp.float32)

    out_row = pl.pallas_call(
        mlp_kernel,
        out_shape=jax.ShapeDtypeStruct((1, b_pad), jnp.float32),
        grid_spec=pltpu.PrefetchScalarGridSpec(
            num_scalar_prefetch=0,
            grid=(n_tiles,),
            in_specs=[
                pl.BlockSpec((1, tile), lambda i: (0, i)),          # x tile
                pl.BlockSpec((H, 1), lambda i: (0, 0)),             # w1 resident
                pl.BlockSpec((H, 1), lambda i: (0, 0)),             # b1 resident
                pl.BlockSpec((_W2_ROWS, H), lambda i: (0, 0)),      # w2 resident
                pl.BlockSpec(memory_space=pltpu.MemorySpace.SMEM),  # b2 scalar
            ],
            out_specs=pl.BlockSpec((1, tile), lambda i: (0, i)),
        ),
        compiler_params=pltpu.CompilerParams(
            dimension_semantics=("parallel",),     # batch is pure data-parallel
            vmem_limit_bytes=48 * 1024 * 1024,     # headroom for the (H,TB) temp
        ),
    )(x_row, w1_col, b1_col, w2_pad, b2_s)

    return out_row[0, :B].reshape(B, 1)


def net_forward(x, w1, b1, w2, b2, *, max_tile=16384):
    """Forward pass matching PyTorch Net: x (B, 1) -> (B, 1).

    Parameter shapes follow nn.Linear conventions:
      w1: (H, 1)  b1: (H,)   [fc1]
      w2: (1, H)  b2: (1,)   [fc2]
    """
    n_cores, use_bf16 = _tpu_config()
    return _net_forward_impl(x, w1, b1, w2, b2,
                             max_tile=max_tile, n_cores=n_cores,
                             use_bf16=use_bf16)


def init_params(key, hidden=128):
    """Deterministic params with nn.Linear-style shapes and init bounds."""
    k1, k2, k3, k4 = jax.random.split(key, 4)
    # fc1 = nn.Linear(1, hidden): fan_in = 1 -> bound = 1.0
    w1 = jax.random.uniform(k1, (hidden, 1), jnp.float32, -1.0, 1.0)
    b1 = jax.random.uniform(k2, (hidden,), jnp.float32, -1.0, 1.0)
    # fc2 = nn.Linear(hidden, 1): fan_in = hidden -> bound = 1/sqrt(hidden)
    bound = 1.0 / (hidden ** 0.5)
    w2 = jax.random.uniform(k3, (1, hidden), jnp.float32, -bound, bound)
    b2 = jax.random.uniform(k4, (1,), jnp.float32, -bound, bound)
    return w1, b1, w2, b2


def net_reference(x, w1, b1, w2, b2):
    """Exact-f32 reference (no matmuls, so no TPU matmul-precision effects)."""
    h = jnp.maximum(x * w1.reshape(1, -1) + b1.reshape(1, -1), 0.0)   # (B, H)
    return jnp.sum(h * w2.reshape(1, -1), axis=-1, keepdims=True) + b2


if __name__ == "__main__":
    key = jax.random.PRNGKey(0)
    kx_small, kx_large, kp = jax.random.split(key, 3)

    H = 128
    w1, b1, w2, b2 = init_params(kp, hidden=H)

    _, use_bf16 = _tpu_config()
    # bf16 elementwise + bf16 MXU pass on v6e/v7x -> bf16-level tolerance;
    # f32 path (v5e) only has MXU default-precision (bf16-pass) error.
    tol = 3e-2 if use_bf16 else 1e-2

    # Small batch (matches the toy example) and a larger, non-aligned batch
    # that exercises exact-fit padding plus the "parallel" grid path.
    for B, kx in ((8, kx_small), (2500, kx_large)):
        x = jax.random.normal(kx, (B, 1), jnp.float32)
        out = jax.block_until_ready(net_forward(x, w1, b1, w2, b2))
        ref = net_reference(x, w1, b1, w2, b2)
        assert out.shape == (B, 1)
        assert jnp.allclose(out, ref, atol=tol, rtol=tol), (
            B, float(jnp.max(jnp.abs(out - ref))))

    print("KERNEL_OK")
</pallas_src>

<mosaic_0001>
module attributes {stable_mosaic.version = 11 : i64} {
  func.func @mlp_kernel(%arg0: i32, %arg1: memref<1x128xbf16, #tpu.memory_space<vmem>>, %arg2: memref<128x1xbf16, #tpu.memory_space<vmem>>, %arg3: memref<128x1xbf16, #tpu.memory_space<vmem>>, %arg4: memref<8x128xbf16, #tpu.memory_space<vmem>>, %arg5: memref<1xf32, #tpu.memory_space<smem>>, %arg6: memref<1x128xf32, #tpu.memory_space<vmem>>) attributes {dimension_semantics = [#tpu.dimension_semantics<parallel>], iteration_bounds = array<i64: 1>, scalar_prefetch = 0 : i64, scratch_operands = 0 : i64, tpu.core_type = #tpu.core_type<tc>, window_params = [{transform_indices = @transform_0, window_bounds = array<i64: 1, 128>}, {pipeline_mode = #tpu.pipeline_mode<synchronous>, transform_indices = @transform_1, window_bounds = array<i64: 128, 1>}, {pipeline_mode = #tpu.pipeline_mode<synchronous>, transform_indices = @transform_2, window_bounds = array<i64: 128, 1>}, {pipeline_mode = #tpu.pipeline_mode<synchronous>, transform_indices = @transform_3, window_bounds = array<i64: 8, 128>}, {transform_indices = @transform_4, window_bounds = array<i64: 1>}, {transform_indices = @transform_5, window_bounds = array<i64: 1, 128>}]} {
    %c0 = arith.constant 0 : index
    %c0_0 = arith.constant 0 : index
    %0 = vector.load %arg1[%c0, %c0_0] : memref<1x128xbf16, #tpu.memory_space<vmem>>, vector<1x128xbf16>
    %c0_1 = arith.constant 0 : index
    %c0_2 = arith.constant 0 : index
    %1 = vector.load %arg2[%c0_1, %c0_2] : memref<128x1xbf16, #tpu.memory_space<vmem>>, vector<128x1xbf16>
    %2 = vector.broadcast %0 : vector<1x128xbf16> to vector<128x128xbf16>
    %3 = vector.broadcast %1 : vector<128x1xbf16> to vector<128x128xbf16>
    %4 = arith.mulf %2, %3 : vector<128x128xbf16>
    %c0_3 = arith.constant 0 : index
    %c0_4 = arith.constant 0 : index
    %5 = vector.load %arg3[%c0_3, %c0_4] : memref<128x1xbf16, #tpu.memory_space<vmem>>, vector<128x1xbf16>
    %6 = vector.broadcast %5 : vector<128x1xbf16> to vector<128x128xbf16>
    %7 = arith.addf %4, %6 : vector<128x128xbf16>
    %cst = arith.constant 0.000000e+00 : bf16
    %8 = vector.broadcast %cst : bf16 to vector<128x128xbf16>
    %9 = arith.maximumf %7, %8 : vector<128x128xbf16>
    %c0_5 = arith.constant 0 : index
    %c0_6 = arith.constant 0 : index
    %10 = vector.load %arg4[%c0_5, %c0_6] : memref<8x128xbf16, #tpu.memory_space<vmem>>, vector<8x128xbf16>
    %cst_7 = arith.constant dense<0.000000e+00> : vector<8x128xf32>
    %11 = tpu.matmul %10, %9, %cst_7 {dimension_numbers = #tpu.dot_dimension_numbers<[1], [0], [0], [1], [0, 0, 1, 1], [], []>} : vector<8x128xbf16>, vector<128x128xbf16>, vector<8x128xf32> -> vector<8x128xf32>
    %12 = vector.extract_strided_slice %11 {offsets = [0, 0], sizes = [1, 128], strides = [1, 1]} : vector<8x128xf32> to vector<1x128xf32>
    %c0_8 = arith.constant 0 : index
    %13 = memref.load %arg5[%c0_8] : memref<1xf32, #tpu.memory_space<smem>>
    %14 = vector.broadcast %13 : f32 to vector<1x128xf32>
    %15 = arith.addf %12, %14 : vector<1x128xf32>
    %c0_9 = arith.constant 0 : index
    %c0_10 = arith.constant 0 : index
    %16 = vector.load %arg6[%c0_9, %c0_10] : memref<1x128xf32, #tpu.memory_space<vmem>>, vector<1x128xf32>
    tpu.vector_store %arg6[%c0_9, %c0_10], %15 {strides = array<i32>} : memref<1x128xf32, #tpu.memory_space<vmem>>, vector<1x128xf32>,
    return
  }
  func.func @transform_0(%arg0: i32) -> (i32, i32) {
    %c0_i32 = arith.constant 0 : i32
    %c0_i32_0 = arith.constant 0 : i32
    return %c0_i32, %arg0 : i32, i32
  }
  func.func @transform_1(%arg0: i32) -> (i32, i32) {
    %c0_i32 = arith.constant 0 : i32
    %c0_i32_0 = arith.constant 0 : i32
    %c0_i32_1 = arith.constant 0 : i32
    return %c0_i32, %c0_i32_0 : i32, i32
  }
  func.func @transform_2(%arg0: i32) -> (i32, i32) {
    %c0_i32 = arith.constant 0 : i32
    %c0_i32_0 = arith.constant 0 : i32
    %c0_i32_1 = arith.constant 0 : i32
    return %c0_i32, %c0_i32_0 : i32, i32
  }
  func.func @transform_3(%arg0: i32) -> (i32, i32) {
    %c0_i32 = arith.constant 0 : i32
    %c0_i32_0 = arith.constant 0 : i32
    %c0_i32_1 = arith.constant 0 : i32
    return %c0_i32, %c0_i32_0 : i32, i32
  }
  func.func @transform_4(%arg0: i32) -> i32 {
    %c0_i32 = arith.constant 0 : i32
    %c0_i32_0 = arith.constant 0 : i32
    return %c0_i32 : i32
  }
  func.func @transform_5(%arg0: i32) -> (i32, i32) {
    %c0_i32 = arith.constant 0 : i32
    %c0_i32_0 = arith.constant 0 : i32
    return %c0_i32, %arg0 : i32, i32
  }
}

</mosaic_0001>

<bundles_post_ra>
// kernel: _net_forward_impl.1
= control target key start
LH: loop header
LB: loop body
LE: loop exit
PB: predicated region body
PF: predicated region fallthrough
CT: control target
= control target key end

     0   :  { %v666_v0 = vmov 0   ;;  %v667_v11 = vmov 0.0   ;;  %vm668_vm0 = vmmov 0   ;;  %v42_v34 = vlaneseq  ;;  %s871_s2 = inlined_call_operand.vmem [shape: bf16[128,1], index: 2, kind: input, shape index: {}]   ;;  %s872_s1 = inlined_call_operand.vmem [shape: bf16[128,1], index: 1, kind: input, shape index: {}]   ;;  %s873_s0 = inlined_call_operand.vmem [shape: bf16[1,128], index: 0, kind: input, shape index: {}]   ;;  %s874_s3 = inlined_call_operand.vmem [shape: bf16[8,128], index: 3, kind: input, shape index: {}]   ;;  %s875_s4 = inlined_call_operand.<no memory space> [shape: f32[1], index: 4, kind: input, shape index: {}]   ;;  %s876_s5 = inlined_call_operand.vmem [shape: f32[1,128], index: 5, kind: output, shape index: {}]  }
   0x1   :  { %665 = vset.pattern.permute.xlu1 %v666_v0  ;;  %664 = vset.pattern.permute.xlu0 %v666_v0  ;;  %v294_v1 = vld [vmem:[%s871_s2] sm:$0xf]  ;;  %v295_v3 = vld [vmem:[%s871_s2 + $0x4] sm:$0xf]  ;;  %v26_v5 = vld [vmem:[%s872_s1 + $0xc] sm:$0xf] }
   0x2   :  { %v23_v2 = vld [vmem:[%s872_s1] sm:$0xf]  ;;  %312 = vperm.xlu1 %665, %v294_v1   ;;  %v24_v4 = vld [vmem:[%s872_s1 + $0x4] sm:$0xf]  ;;  %v25_v6 = vld [vmem:[%s872_s1 + $0x8] sm:$0xf]  ;;  %640 = vmatprep.subr.bf16.mxu0 %v667_v11 }
   0x3   :  { %48 = vperm.xlu0 %664, %v23_v2   ;;  %v297_v7 = vld [vmem:[%s871_s2 + $0xc] sm:$0xf]  ;;  %v296_v8 = vld [vmem:[%s871_s2 + $0x8] sm:$0xf]  ;;  %v28_v9 = vld [vmem:[%s872_s1 + $0x14] sm:$0xf]  ;;  %656 = vmatprep.mubr.msk.bf16.mxu0 %vm668_vm0, %v667_v11 }
   0x4   :  { %v27_v10 = vld [vmem:[%s872_s1 + $0x10] sm:$0xf]  ;;  %v299_v12 = vld [vmem:[%s871_s2 + $0x14] sm:$0xf]  ;;  %v30_v14 = vld [vmem:[%s872_s1 + $0x1c] sm:$0xf] }
   0x5   :  { %v298_v13 = vld [vmem:[%s871_s2 + $0x10] sm:$0xf]  ;;  %v29_v15 = vld [vmem:[%s872_s1 + $0x18] sm:$0xf]  ;;  %v301_v16 = vld [vmem:[%s871_s2 + $0x1c] sm:$0xf] }
   0x6   :  { %324 = vperm.xlu1 %665, %v295_v3   ;;  %v300_v17 = vld [vmem:[%s871_s2 + $0x18] sm:$0xf]  ;;  %v32_v18 = vld [vmem:[%s872_s1 + $0x24] sm:$0xf]  ;;  %v31_v19 = vld [vmem:[%s872_s1 + $0x20] sm:$0xf] }
   0x7   :  { %60 = vperm.xlu0 %664, %v24_v4   ;;  %v303_v20 = vld [vmem:[%s871_s2 + $0x24] sm:$0xf]  ;;  %v302_v21 = vld [vmem:[%s871_s2 + $0x20] sm:$0xf]  ;;  %v34_v22 = vld [vmem:[%s872_s1 + $0x2c] sm:$0xf] }
   0x8   :  { %v33_v23 = vld [vmem:[%s872_s1 + $0x28] sm:$0xf]  ;;  %v305_v24 = vld [vmem:[%s871_s2 + $0x2c] sm:$0xf]  ;;  %v36_v26 = vld [vmem:[%s872_s1 + $0x34] sm:$0xf] }
   0x9   :  { %v304_v25 = vld [vmem:[%s871_s2 + $0x28] sm:$0xf]  ;;  %v35_v27 = vld [vmem:[%s872_s1 + $0x30] sm:$0xf]  ;;  %v307_v28 = vld [vmem:[%s871_s2 + $0x34] sm:$0xf] }
   0xa   :  { %84 = vperm.xlu1 %665, %v26_v5   ;;  %v306_v29 = vld [vmem:[%s871_s2 + $0x30] sm:$0xf]  ;;  %v38_v30 = vld [vmem:[%s872_s1 + $0x3c] sm:$0xf]  ;;  %v37_v31 = vld [vmem:[%s872_s1 + $0x38] sm:$0xf] }
   0xb   :  { %72 = vperm.xlu0 %664, %v25_v6   ;;  %v309_v32 = vld [vmem:[%s871_s2 + $0x3c] sm:$0xf]  ;;  %v308_v33 = vld [vmem:[%s871_s2 + $0x38] sm:$0xf]  ;;  %v669_v35 = vmov 839922192  }
   0xc   :  { %v52_v36 = vunpack.c.l.s4 %v669_v35  ;;  %v43_v37 = vshrl.u32 %v42_v34, 7  ;;  %v22_v39 = vld [vmem:[%s873_s0] sm:$0x1] }
   0xd   :  { %v40_v44 = vpack.i.b16 %v22_v39, %v22_v39 }
   0xe   :  { %348 = vperm.xlu1 %665, %v297_v7   ;;  %v53_v38 = vunpack.c.0.s8 %v52_v36  ;;  %v44_v43 = vsub.s32 0, %v43_v37 }
   0xf   :  { %336 = vperm.xlu0 %664, %v296_v8  }
  0x10   :  { %v803_v42 = vsub.s32 %v53_v38, %v43_v37  ;;  %v807_v49 = vrot.slane %v40_v44, %v44_v43 }
  0x12   :  { %108 = vperm.xlu1 %665, %v28_v9  }
  0x13   :  { %96 = vperm.xlu0 %664, %v27_v10  }
  0x16   :  { %372 = vperm.xlu1 %665, %v299_v12  }
  0x17   :  { %360 = vperm.xlu0 %664, %v298_v13  }
  0x1a   :  { %132 = vperm.xlu1 %665, %v30_v14  }
  0x1b   :  { %120 = vperm.xlu0 %664, %v29_v15  }
  0x1e   :  { %396 = vperm.xlu1 %665, %v301_v16  }
  0x1f   :  { %384 = vperm.xlu0 %664, %v300_v17  }
  0x22   :  { %156 = vperm.xlu1 %665, %v32_v18  }
  0x23   :  { %144 = vperm.xlu0 %664, %v31_v19  }
  0x26   :  { %420 = vperm.xlu1 %665, %v303_v20  }
  0x27   :  { %408 = vperm.xlu0 %664, %v302_v21  }
  0x2a   :  { %180 = vperm.xlu1 %665, %v34_v22  }
  0x2b   :  { %168 = vperm.xlu0 %664, %v33_v23  }
  0x2e   :  { %444 = vperm.xlu1 %665, %v305_v24  }
  0x2f   :  { %432 = vperm.xlu0 %664, %v304_v25  }
  0x32   :  { %204 = vperm.xlu1 %665, %v36_v26  }
  0x33   :  { %192 = vperm.xlu0 %664, %v35_v27  }
  0x36   :  { %468 = vperm.xlu1 %665, %v307_v28  }
  0x37   :  { %456 = vperm.xlu0 %664, %v306_v29  }
  0x3a   :  { %228 = vperm.xlu1 %665, %v38_v30  }
  0x3b   :  { %216 = vperm.xlu0 %664, %v37_v31  }
  0x3e   :  { %492 = vperm.xlu1 %665, %v309_v32  }
  0x3f   :  { %480 = vperm.xlu0 %664, %v308_v33  }
  0x81   :  { %v313_v40 = vpop.permute.xlu1 %312 }
  0x82   :  { %v49_v41 = vpop.permute.xlu0 %48  ;;  %v321_v51 = vrot.slane %v313_v40, %v803_v42 }
  0x83   :  { %v57_v47 = vrot.slane %v49_v41, %v803_v42 }
  0x85   :  { %v325_v45 = vpop.permute.xlu1 %324 }
  0x86   :  { %v61_v46 = vpop.permute.xlu0 %60  ;;  %v333_v48 = vrot.slane %v325_v45, %v803_v42 }
  0x87   :  { %v69_v50 = vrot.slane %v61_v46, %v803_v42 }
  0x88   :  { %v623_v55 = vcombine.low %v321_v51, %v333_v48 }
  0x89   :  { %v615_v52 = vcombine.low %v57_v47, %v69_v50  ;;  %v85_v53 = vpop.permute.xlu1 %84 }
  0x8a   :  { %v73_v54 = vpop.permute.xlu0 %72  ;;  %v93_v57 = vrot.slane %v85_v53, %v803_v42 }
  0x8b   :  { %v286_v56 = vmul.bf16 %v615_v52, %v807_v49  ;;  %v81_v58 = vrot.slane %v73_v54, %v803_v42 }
  0x8d   :  { %v616_v59 = vcombine.low %v81_v58, %v93_v57  ;;  %v550_v60 = vadd.bf16 %v623_v55, %v286_v56  ;;  %v349_v61 = vpop.permute.xlu1 %348 }
  0x8e   :  { %v337_v62 = vpop.permute.xlu0 %336  ;;  %v357_v63 = vrot.slane %v349_v61, %v803_v42 }
  0x8f   :  { %v345_v1 = vrot.slane %v337_v62, %v803_v42  ;;  %v558_v2 = vmax.bf16 %v666_v0, %v550_v60  ;;  %v287_v3 = vmul.bf16 %v616_v59, %v807_v49 }
  0x91   :  { %v624_v4 = vcombine.low %v345_v1, %v357_v63  ;;  %641 = vmatpush3.bf16.msra.mxu0 %v558_v2  ;;  %v109_v5 = vpop.permute.xlu1 %108 }
  0x92   :  { %v97_v6 = vpop.permute.xlu0 %96  ;;  %642 = vmatprep.subr.bf16.mxu0 %v667_v11  ;;  %v117_v8 = vrot.slane %v109_v5, %v803_v42 }
  0x93   :  { %v551_v7 = vadd.bf16 %v624_v4, %v287_v3  ;;  %v105_v9 = vrot.slane %v97_v6, %v803_v42 }
  0x95   :  { %v617_v10 = vcombine.low %v105_v9, %v117_v8  ;;  %v559_v12 = vmax.bf16 %v666_v0, %v551_v7  ;;  %v373_v13 = vpop.permute.xlu1 %372 }
  0x96   :  { %v361_v14 = vpop.permute.xlu0 %360  ;;  %v381_v15 = vrot.slane %v373_v13, %v803_v42 }
  0x97   :  { %v369_v16 = vrot.slane %v361_v14, %v803_v42  ;;  %643 = vmatpush3.bf16.msra.mxu0 %v559_v12  ;;  %v288_v17 = vmul.bf16 %v617_v10, %v807_v49 }
  0x98   :  { %644 = vmatprep.subr.bf16.mxu0 %v667_v11 }
  0x99   :  { %v625_v18 = vcombine.low %v369_v16, %v381_v15  ;;  %v133_v19 = vpop.permute.xlu1 %132 }
  0x9a   :  { %v121_v20 = vpop.permute.xlu0 %120  ;;  %v141_v22 = vrot.slane %v133_v19, %v803_v42 }
  0x9b   :  { %v552_v21 = vadd.bf16 %v625_v18, %v288_v17  ;;  %v129_v23 = vrot.slane %v121_v20, %v803_v42 }
  0x9d   :  { %v618_v24 = vcombine.low %v129_v23, %v141_v22  ;;  %v560_v25 = vmax.bf16 %v666_v0, %v552_v21  ;;  %v397_v26 = vpop.permute.xlu1 %396 }
  0x9e   :  { %v385_v27 = vpop.permute.xlu0 %384  ;;  %v405_v28 = vrot.slane %v397_v26, %v803_v42  ;;  %v566_v26 = vld [vmem:[%s874_s3] sm:$0xf] }
  0x9f   :  { %v393_v29 = vrot.slane %v385_v27, %v803_v42  ;;  %645 = vmatpush3.bf16.msra.mxu0 %v560_v25  ;;  %v289_v30 = vmul.bf16 %v618_v24, %v807_v49  ;;  %v608_v27 = vstv %s875_s4 }
  0xa0   :  { %646 = vmatprep.subr.bf16.mxu0 %v667_v11 }
  0xa1   :  { %v626_v31 = vcombine.low %v393_v29, %v405_v28  ;;  %v157_v32 = vpop.permute.xlu1 %156 }
  0xa2   :  { %v145_v33 = vpop.permute.xlu0 %144  ;;  %v165_v35 = vrot.slane %v157_v32, %v803_v42 }
  0xa3   :  { %v553_v34 = vadd.bf16 %v626_v31, %v289_v30  ;;  %v153_v36 = vrot.slane %v145_v33, %v803_v42 }
  0xa5   :  { %v619_v37 = vcombine.low %v153_v36, %v165_v35  ;;  %v561_v38 = vmax.bf16 %v666_v0, %v553_v34  ;;  %v421_v39 = vpop.permute.xlu1 %420 }
  0xa6   :  { %v409_v40 = vpop.permute.xlu0 %408  ;;  %v429_v41 = vrot.slane %v421_v39, %v803_v42 }
  0xa7   :  { %v417_v43 = vrot.slane %v409_v40, %v803_v42  ;;  %647 = vmatpush3.bf16.msra.mxu0 %v561_v38  ;;  %v290_v44 = vmul.bf16 %v619_v37, %v807_v49 }
  0xa8   :  { %648 = vmatprep.subr.bf16.mxu0 %v667_v11 }
  0xa9   :  { %v627_v45 = vcombine.low %v417_v43, %v429_v41  ;;  %v181_v46 = vpop.permute.xlu1 %180 }
  0xaa   :  { %v169_v47 = vpop.permute.xlu0 %168  ;;  %v189_v50 = vrot.slane %v181_v46, %v803_v42 }
  0xab   :  { %v554_v48 = vadd.bf16 %v627_v45, %v290_v44  ;;  %v177_v51 = vrot.slane %v169_v47, %v803_v42 }
  0xad   :  { %v620_v52 = vcombine.low %v177_v51, %v189_v50  ;;  %v562_v53 = vmax.bf16 %v666_v0, %v554_v48  ;;  %v445_v54 = vpop.permute.xlu1 %444 }
  0xae   :  { %v433_v55 = vpop.permute.xlu0 %432  ;;  %v453_v56 = vrot.slane %v445_v54, %v803_v42 }
  0xaf   :  { %v441_v57 = vrot.slane %v433_v55, %v803_v42  ;;  %649 = vmatpush3.bf16.msra.mxu0 %v562_v53  ;;  %v291_v58 = vmul.bf16 %v620_v52, %v807_v49 }
  0xb0   :  { %650 = vmatprep.subr.bf16.mxu0 %v667_v11 }
  0xb1   :  { %v628_v59 = vcombine.low %v441_v57, %v453_v56  ;;  %v205_v60 = vpop.permute.xlu1 %204 }
  0xb2   :  { %v193_v61 = vpop.permute.xlu0 %192  ;;  %v213_v63 = vrot.slane %v205_v60, %v803_v42 }
  0xb3   :  { %v555_v62 = vadd.bf16 %v628_v59, %v291_v58  ;;  %v201_v1 = vrot.slane %v193_v61, %v803_v42 }
  0xb5   :  { %v621_v2 = vcombine.low %v201_v1, %v213_v63  ;;  %v563_v3 = vmax.bf16 %v666_v0, %v555_v62  ;;  %v469_v4 = vpop.permute.xlu1 %468 }
  0xb6   :  { %v457_v5 = vpop.permute.xlu0 %456  ;;  %v477_v6 = vrot.slane %v469_v4, %v803_v42 }
  0xb7   :  { %v465_v7 = vrot.slane %v457_v5, %v803_v42  ;;  %651 = vmatpush3.bf16.msra.mxu0 %v563_v3  ;;  %v292_v8 = vmul.bf16 %v621_v2, %v807_v49 }
  0xb8   :  { %652 = vmatprep.subr.bf16.mxu0 %v667_v11 }
  0xb9   :  { %v629_v9 = vcombine.low %v465_v7, %v477_v6  ;;  %v229_v10 = vpop.permute.xlu1 %228 }
  0xba   :  { %v217_v12 = vpop.permute.xlu0 %216  ;;  %v237_v14 = vrot.slane %v229_v10, %v803_v42 }
  0xbb   :  { %v556_v13 = vadd.bf16 %v629_v9, %v292_v8  ;;  %v225_v15 = vrot.slane %v217_v12, %v803_v42 }
  0xbd   :  { %v622_v16 = vcombine.low %v225_v15, %v237_v14  ;;  %v564_v17 = vmax.bf16 %v666_v0, %v556_v13  ;;  %v493_v18 = vpop.permute.xlu1 %492 }
  0xbe   :  { %v481_v19 = vpop.permute.xlu0 %480  ;;  %v501_v20 = vrot.slane %v493_v18, %v803_v42 }
  0xbf   :  { %v489_v21 = vrot.slane %v481_v19, %v803_v42  ;;  %653 = vmatpush3.bf16.msra.mxu0 %v564_v17  ;;  %v293_v22 = vmul.bf16 %v622_v16, %v807_v49 }
  0xc0   :  { %654 = vmatprep.subr.bf16.mxu0 %v667_v11 }
  0xc1   :  { %v630_v23 = vcombine.low %v489_v21, %v501_v20 }
  0xc3   :  { %v557_v24 = vadd.bf16 %v630_v23, %v293_v22 }
  0xc5   :  { %v565_v25 = vmax.bf16 %v666_v0, %v557_v24 }
  0xc7   :  { %655 = vmatpush3.bf16.msra.mxu0 %v565_v25 }
  0xca   :  { %657 = vmatmul.mubr.bf16.vlgmr.msra.gmra.mrb[0].mxu0 %v566_v26 }
 0x19d   :  { %v601_v42 = vpop.f32.mrb[0].mxu0 }
 0x19e   :  { %v609_v28 = vadd.f32 %v608_v27, %v601_v42  ;;  %v658_v29 = vpop.f32.mrb[1].mxu0 }
 0x19f   :  { %v604_v11 = vpop.f32.mrb[2].mxu0 }
 0x1a0   :  { %610 = vst [vmem:[%s876_s5] sm:$0x1] %v609_v28  ;;  %v659_v49 = vpop.f32.mrb[3].mxu0 }

</bundles_post_ra>
